<compile_context>
chip_gen: v7x
topology: tpu7x:2x2x1
jax: 0.10.0
libtpu: 0.0.40
codegen_flags: <defaults>
</compile_context>

<pallas_src>
import jax
import jax.numpy as jnp
from jax.experimental import pallas as pl
from jax.experimental.pallas import tpu as pltpu


def _softmax_layer_kernel(x_ref, mask_ref, o_ref):
    # x_ref:    (TB, F, TT) data block
    # mask_ref: (F, 1) float mask, 1.0 where the feature is in softmax_dims
    x = x_ref[...].astype(jnp.float32)
    m = mask_ref[...]                        # (F, 1) -> broadcasts over (TB, F, TT)

    neg_big = jnp.float32(-1e30)
    x_masked = jnp.where(m > 0, x, neg_big)

    # Numerically stable masked softmax over the feature (sublane) axis.
    x_max = jnp.max(x_masked, axis=1, keepdims=True)
    e = jnp.exp(x_masked - x_max) * m        # non-selected channels -> exactly 0
    denom = jnp.sum(e, axis=1, keepdims=True)
    out = e * pl.reciprocal(denom, approx=True)   # EUP slot, frees a VPU multiply

    o_ref[...] = out.astype(o_ref.dtype)


def _choose_tiles(B, F, T, itemsize, target_block_bytes=2 * 1024 * 1024):
    # Lane (time) tile: keep full T when modest; otherwise a large multiple of
    # 128 so stores stay lane-dense (unmasked vst).
    tt = T if T <= 2048 else 2048
    # Batch tile: fill the per-block byte budget (double-buffered in/out fits
    # comfortably under the 48 MiB VMEM limit on every generation).
    bytes_per_batch_row = F * tt * itemsize
    tb = max(1, min(B, target_block_bytes // max(1, bytes_per_batch_row)))
    return int(tb), int(tt)


def softmax_layer(data, softmax_dims):
    """data: [B, F, T] float array. Returns array of same shape/dtype."""
    B, F, T = data.shape

    softmax_dims = list(softmax_dims)
    if len(softmax_dims) == 0:
        # PyTorch module zeroes every non-softmax channel; with no softmax
        # channels the result is all zeros (avoids 0/0 inside the kernel).
        return jnp.zeros_like(data)

    # Tiny (F, 1) selection mask; broadcast to (TB, F, TT) happens in-kernel.
    sel = jnp.zeros((F,), dtype=jnp.float32).at[jnp.asarray(softmax_dims)].set(1.0)
    mask = sel[:, None]

    tb, tt = _choose_tiles(B, F, T, jnp.dtype(data.dtype).itemsize)
    grid = (pl.cdiv(B, tb), pl.cdiv(T, tt))

    return pl.pallas_call(
        _softmax_layer_kernel,
        out_shape=jax.ShapeDtypeStruct((B, F, T), data.dtype),
        grid_spec=pltpu.PrefetchScalarGridSpec(
            num_scalar_prefetch=0,
            grid=grid,
            in_specs=[
                pl.BlockSpec((tb, F, tt), lambda b, t: (b, 0, t)),
                pl.BlockSpec((F, 1), lambda b, t: (0, 0)),
            ],
            out_specs=pl.BlockSpec((tb, F, tt), lambda b, t: (b, 0, t)),
        ),
        compiler_params=pltpu.CompilerParams(
            dimension_semantics=("parallel", "parallel"),
            vmem_limit_bytes=48 * 1024 * 1024,
        ),
        # In-place semantics of the PyTorch module: write back into `data`'s
        # buffer when the caller donates it (XLA copies otherwise; harmless).
        input_output_aliases={0: 0},
    )(data, mask)


def _reference(data, softmax_dims, all_dims):
    # Pure-JAX reference mirroring the PyTorch in-place semantics.
    no_softmax_dims = sorted(set(all_dims) - set(softmax_dims))
    out = data
    if len(softmax_dims) > 0:
        sel = jnp.asarray(softmax_dims)
        sub = jax.nn.softmax(out[:, sel, :], axis=1)
        out = out.at[:, sel, :].set(sub)
    if no_softmax_dims:
        out = out.at[:, jnp.asarray(no_softmax_dims), :].set(0.0)
    return out


if __name__ == "__main__":
    key = jax.random.PRNGKey(0)

    B, F, T = 2, 8, 16
    all_dims = list(range(F))
    softmax_dims = [0, 2, 3, 5]          # features to softmax over
    no_softmax_dims = sorted(set(all_dims) - set(softmax_dims))  # zeroed out

    data = jax.random.normal(key, (B, F, T), dtype=jnp.float32)

    out = softmax_layer(data, softmax_dims)
    out = jax.block_until_ready(out)

    ref = _reference(data, softmax_dims, all_dims)

    assert out.shape == data.shape and out.dtype == data.dtype
    # Loose tolerance accounts for the EUP approximate reciprocal (~2^-12 rel).
    assert jnp.allclose(out, ref, atol=5e-3, rtol=5e-3), "mismatch vs reference"
    # Non-selected channels must be exactly zero (guaranteed by the `* m`).
    assert bool(jnp.all(out[:, jnp.asarray(no_softmax_dims), :] == 0.0))

    print("KERNEL_OK")
</pallas_src>

<mosaic_0001>
module attributes {stable_mosaic.version = 11 : i64} {
  func.func @_softmax_layer_kernel(%arg0: i32, %arg1: i32, %arg2: memref<2x8x16xf32, #tpu.memory_space<vmem>>, %arg3: memref<8x1xf32, #tpu.memory_space<vmem>>, %arg4: memref<2x8x16xf32, #tpu.memory_space<vmem>>) attributes {dimension_semantics = [#tpu.dimension_semantics<parallel>, #tpu.dimension_semantics<parallel>], iteration_bounds = array<i64: 1, 1>, scalar_prefetch = 0 : i64, scratch_operands = 0 : i64, tpu.core_type = #tpu.core_type<tc>, window_params = [{transform_indices = @transform_0, window_bounds = array<i64: 2, 8, 16>}, {pipeline_mode = #tpu.pipeline_mode<synchronous>, transform_indices = @transform_1, window_bounds = array<i64: 8, 1>}, {transform_indices = @transform_2, window_bounds = array<i64: 2, 8, 16>}]} {
    %c0 = arith.constant 0 : index
    %c0_0 = arith.constant 0 : index
    %c0_1 = arith.constant 0 : index
    %0 = vector.load %arg2[%c0, %c0_0, %c0_1] : memref<2x8x16xf32, #tpu.memory_space<vmem>>, vector<2x8x16xf32>
    %c0_2 = arith.constant 0 : index
    %c0_3 = arith.constant 0 : index
    %1 = vector.load %arg3[%c0_2, %c0_3] : memref<8x1xf32, #tpu.memory_space<vmem>>, vector<8x1xf32>
    %cst = arith.constant 0.000000e+00 : f32
    %2 = vector.broadcast %cst : f32 to vector<8x1xf32>
    %3 = arith.cmpf ogt, %1, %2 : vector<8x1xf32>
    %cst_4 = arith.constant -1.000000e+30 : f32
    %4 = vector.shape_cast %3 : vector<8x1xi1> to vector<1x8x1xi1>
    %5 = vector.broadcast %4 : vector<1x8x1xi1> to vector<2x8x16xi1>
    %6 = vector.broadcast %cst_4 : f32 to vector<2x8x16xf32>
    %7 = arith.select %5, %0, %6 : vector<2x8x16xi1>, vector<2x8x16xf32>
    %cst_5 = arith.constant dense<0xFF800000> : vector<2x16xf32>
    %8 = vector.multi_reduction <maximumf>, %7, %cst_5 [1] : vector<2x8x16xf32> to vector<2x16xf32>
    %9 = vector.shape_cast %8 : vector<2x16xf32> to vector<2x1x16xf32>
    %10 = vector.broadcast %9 : vector<2x1x16xf32> to vector<2x8x16xf32>
    %11 = arith.subf %7, %10 : vector<2x8x16xf32>
    %12 = math.exp %11 : vector<2x8x16xf32>
    %13 = vector.shape_cast %1 : vector<8x1xf32> to vector<1x8x1xf32>
    %14 = vector.broadcast %13 : vector<1x8x1xf32> to vector<2x8x16xf32>
    %15 = arith.mulf %12, %14 : vector<2x8x16xf32>
    %cst_6 = arith.constant dense<0.000000e+00> : vector<2x16xf32>
    %16 = vector.multi_reduction <add>, %15, %cst_6 [1] : vector<2x8x16xf32> to vector<2x16xf32>
    %17 = vector.shape_cast %16 : vector<2x16xf32> to vector<2x1x16xf32>
    %18 = tpu.reciprocal %17 {approx = true} : vector<2x1x16xf32> -> vector<2x1x16xf32>
    %19 = vector.broadcast %18 : vector<2x1x16xf32> to vector<2x8x16xf32>
    %20 = arith.mulf %15, %19 : vector<2x8x16xf32>
    %c0_7 = arith.constant 0 : index
    %c0_8 = arith.constant 0 : index
    %c0_9 = arith.constant 0 : index
    %21 = vector.load %arg4[%c0_7, %c0_8, %c0_9] : memref<2x8x16xf32, #tpu.memory_space<vmem>>, vector<2x8x16xf32>
    tpu.vector_store %arg4[%c0_7, %c0_8, %c0_9], %20 {strides = array<i32>} : memref<2x8x16xf32, #tpu.memory_space<vmem>>, vector<2x8x16xf32>,
    return
  }
  func.func @transform_0(%arg0: i32, %arg1: i32) -> (i32, i32, i32) {
    %c0_i32 = arith.constant 0 : i32
    %c0_i32_0 = arith.constant 0 : i32
    return %arg0, %c0_i32, %arg1 : i32, i32, i32
  }
  func.func @transform_1(%arg0: i32, %arg1: i32) -> (i32, i32) {
    %c0_i32 = arith.constant 0 : i32
    %c0_i32_0 = arith.constant 0 : i32
    %c0_i32_1 = arith.constant 0 : i32
    return %c0_i32, %c0_i32_0 : i32, i32
  }
  func.func @transform_2(%arg0: i32, %arg1: i32) -> (i32, i32, i32) {
    %c0_i32 = arith.constant 0 : i32
    %c0_i32_0 = arith.constant 0 : i32
    return %arg0, %c0_i32, %arg1 : i32, i32, i32
  }
}

</mosaic_0001>

<bundles_post_ra>
// kernel: tpu_custom_call.1
= control target key start
LH: loop header
LB: loop body
LE: loop exit
PB: predicated region body
PF: predicated region fallthrough
CT: control target
= control target key end

     0   :  { %7 = vsyncpa [#allocation3], 0  ;;  %s223_s0 = inlined_call_operand.hbm [shape: f32[2,8,16], index: 0, kind: input, shape index: {}, may-alias: {0,2}]   ;;  %s224_s1 = inlined_call_operand.vmem [shape: f32[8,1], index: 1, kind: input, shape index: {}]   ;;  %s225_s2 = inlined_call_operand.hbm [shape: f32[2,8,16], index: 2, kind: output, shape index: {}, may-alias: {0,2}]  }
   0x1   :  { %8 = vsyncpa [#allocation4], 0  ;;  %s164_s9 = smov [#allocation2]   ;;  %s116_s13 = scalar_lea.hbm %s223_s0, 256 }
   0x2   :  { %s14_s10 = sshll.u32 %s164_s9, 4  ;;  %p117_p0 = scmp.ne.s32.totalorder %s223_s0, %s116_s13  ;;  %s15_s10 = int_to_ptr.vmem [resolvable:$true] %s14_s10 }
   0x3   :  { %p120_p1 = scmp.lt.u32.totalorder %s116_s13, %s223_s0 }
   0x5   :  { %p122_p2 = pnand %p120_p1, %p117_p0 }
   0x7   :  { %125 = shalt.err (!%p122_p2)
}
   0x8   :  { %s126_s18 = scalar_lea.vmem %s15_s10, 256  ;;  %p131_p4 = scmp.lt.s32.totalorder %s15_s10, %s15_s10 }
   0x9   :  { %p127_p3 = scmp.ne.s32.totalorder %s15_s10, %s126_s18  ;;  %p132_p5 = scmp.lt.s32.totalorder %s126_s18, %s126_s18 }
   0xb   :  { %p133_p6 = por %p132_p5, %p131_p4 }
   0xd   :  { %p134_p7 = pnand %p133_p6, %p127_p3 }
   0xf   :  { %137 = shalt.err (!%p134_p7)
}
  0x10   :  { %s165_s19 = smov 128   ;;  %s166_s20 = smov 8  }
  0x11   :  { %20 = dma.hbm_to_vmem [thread:$0]  %s223_s0, 256, %s15_s10, [#allocation3], %s165_s19, %s165_s19, %s166_s20  }
  0x12   :  { %160 = dma.done.wait [#allocation3], 256  }
  0x13   :  { %161 = vsyncadd [#allocation3], 4294967040  ;;  %v167_v0 = vmov 0   ;;  %v28_v1 = vld [vmem:[%s224_s1] sm:$0xff]  ;;  %v27_v4 = vld [vmem:[#allocation2 + $0x8] sm:$0xff]  ;;  %vm37_vm1 = vcmask 130048  }
  0x14   :  { %107 = vset.pattern.permute.xlu0 %v167_v0  ;;  %vm29_vm0 = vcmp.gt.f32.partialorder %v28_v1, 0.0  ;;  %v26_v3 = vld [vmem:[#allocation2] sm:$0xff]  ;;  %s168_s0 = smov [#allocation5]  }
  0x15   :  { %v30_v2 = vsel %vm29_vm0, 1, %v167_v0  ;;  %s90_s1 = sshll.u32 %s168_s0, 4  ;;  %s91_s1 = int_to_ptr.vmem [resolvable:$true] %s90_s1 }
  0x16   :  { %32 = vperm.xlu0 %107, %v30_v2   ;;  %s138_s25 = scalar_lea.vmem %s91_s1, 256  ;;  %p143_p9 = scmp.lt.s32.totalorder %s91_s1, %s91_s1 }
  0x17   :  { %p139_p8 = scmp.ne.s32.totalorder %s91_s1, %s138_s25  ;;  %p144_p10 = scmp.lt.s32.totalorder %s138_s25, %s138_s25 }
  0x19   :  { %p145_p11 = por %p144_p10, %p143_p9 }
  0x1a   :  { %60 = vperm.xlu0 %107, %v28_v1  }
  0x1b   :  { %p146_p12 = pnand %p145_p11, %p139_p8 }
  0x95   :  { %v33_v5 = vpop.permute.xlu0 %32 }
  0x96   :  { %vm34_vm2 = vcmp.eq.s32.totalorder %v33_v5, 1 }
  0x97   :  { %v35_v6 = vsel %vm34_vm2, %v26_v3, -1e+30  ;;  %v36_v7 = vsel %vm34_vm2, %v27_v4, -1e+30 }
  0x98   :  { %v38_v8 = vsel %vm37_vm1, %v35_v6, -inf  ;;  %v45_v9 = vsel %vm37_vm1, %v36_v7, -inf }
  0x99   :  { %v39_v10 = vrot.slane %v38_v8, 4  ;;  %v46_v11 = vrot.slane %v45_v9, 4  ;;  %v61_v27 = vpop.permute.xlu0 %60 }
  0x9b   :  { %v40_v12 = vmax.f32 %v38_v8, %v39_v10  ;;  %v47_v13 = vmax.f32 %v45_v9, %v46_v11 }
  0x9d   :  { %v41_v14 = vrot.slane %v40_v12, 2  ;;  %v48_v15 = vrot.slane %v47_v13, 2 }
  0x9f   :  { %v42_v16 = vmax.f32 %v40_v12, %v41_v14  ;;  %v49_v17 = vmax.f32 %v47_v13, %v48_v15 }
  0xa1   :  { %v43_v18 = vrot.slane %v42_v16, 1  ;;  %v50_v19 = vrot.slane %v49_v17, 1 }
  0xa3   :  { %v44_v20 = vmax.f32 %v42_v16, %v43_v18  ;;  %v51_v21 = vmax.f32 %v49_v17, %v50_v19 }
  0xa5   :  { %v52_v22 = vsub.f32 %v35_v6, %v44_v20  ;;  %v53_v23 = vsub.f32 %v36_v7, %v51_v21 }
  0xa7   :  { %v54_v24 = vmul.f32 1.442695, %v52_v22  ;;  %v56_v25 = vmul.f32 1.442695, %v53_v23 }
  0xa9   :  { %108 = vpow2.f32 %v54_v24 }
  0xaa   :  { %110 = vpow2.f32 %v56_v25 }
  0xb3   :  { %v109_v26 = vpop.eup %108 }
  0xb4   :  { %v111_v28 = vpop.eup %110  ;;  %v63_v29 = vmul.f32 %v109_v26, %v61_v27 }
  0xb5   :  { %v64_v30 = vmul.f32 %v111_v28, %v61_v27 }
  0xb6   :  { %v65_v31 = vsel %vm37_vm1, %v63_v29, 0.0 }
  0xb7   :  { %v66_v32 = vrot.slane %v65_v31, 4  ;;  %v72_v33 = vsel %vm37_vm1, %v64_v30, 0.0 }
  0xb8   :  { %v73_v34 = vrot.slane %v72_v33, 4 }
  0xb9   :  { %v67_v35 = vadd.f32 %v66_v32, %v65_v31 }
  0xba   :  { %v74_v36 = vadd.f32 %v73_v34, %v72_v33 }
  0xbb   :  { %v68_v37 = vrot.slane %v67_v35, 2 }
  0xbc   :  { %v75_v38 = vrot.slane %v74_v36, 2 }
  0xbd   :  { %v69_v39 = vadd.f32 %v68_v37, %v67_v35 }
  0xbe   :  { %v76_v40 = vadd.f32 %v75_v38, %v74_v36 }
  0xbf   :  { %v70_v41 = vrot.slane %v69_v39, 1 }
  0xc0   :  { %v77_v42 = vrot.slane %v76_v40, 1 }
  0xc1   :  { %v71_v43 = vadd.f32 %v70_v41, %v69_v39 }
  0xc2   :  { %v78_v44 = vadd.f32 %v77_v42, %v76_v40 }
  0xc3   :  { %112 = vrcp.f32 %v71_v43 }
  0xc4   :  { %114 = vrcp.f32 %v78_v44 }
  0xcd   :  { %v113_v45 = vpop.eup %112 }
  0xce   :  { %v115_v46 = vpop.eup %114  ;;  %v81_v47 = vmul.f32 %v113_v45, %v63_v29 }
  0xcf   :  { %v82_v48 = vmul.f32 %v115_v46, %v64_v30 }
  0xd0   :  { %83 = vst.msk [vmem:[#allocation5] sm:$0xff] %vm37_vm1, %v81_v47 }
  0xd1   :  { %84 = vst.msk [vmem:[#allocation5 + $0x8] sm:$0xff] %vm37_vm1, %v82_v48 }
  0xd2   :  { %149 = shalt.err (!%p146_p12)
}
  0xd3   :  { %s150_s28 = scalar_lea.hbm %s225_s2, 256 }
  0xd4   :  { %p151_p13 = scmp.ne.s32.totalorder %s225_s2, %s150_s28  ;;  %p154_p0 = scmp.lt.u32.totalorder %s150_s28, %s225_s2 }
  0xd6   :  { %p156_p1 = pnand %p154_p0, %p151_p13 }
  0xd8   :  { %159 = shalt.err (!%p156_p1)
}
  0xd9   :  { %96 = dma.vmem_to_hbm [thread:$0]  %s91_s1, 256, %s225_s2, [#allocation4], %s165_s19, %s165_s19, %s166_s20  }
  0xda   :  { %162 = dma.done.wait [#allocation4], 256  }
  0xdb   :  { %163 = vsyncadd [#allocation4], 4294967040 }
  0xdc   :  { %100 = vsyncpa [#allocation3], 1 }
  0xdd   :  { %101 = vsyncpa [#allocation4], 1 }

</bundles_post_ra>
